<compile_context>
chip_gen: v5e
topology: v5e:2x2
jax: 0.10.0
libtpu: 0.0.40
codegen_flags: <defaults>
</compile_context>

<pallas_src>
import jax
import jax.numpy as jnp
import numpy as np
from jax import lax
from jax.experimental import pallas as pl
from jax.experimental.pallas import tpu as pltpu

EPS = 1e-5  # nn.BatchNorm2d default eps


def basic_block_kernel(xpad_ref, xres_ref, t1_ref, g1_ref, b1_ref,
                       t2_ref, g2_ref, b2_ref, sel_ref, out_ref, pad_scr):
    """Whole BasicBlock, everything resident in VMEM.

    xpad_ref : (N, H+2, W*C)  bf16  row-padded input (halo rows are zero)
    xres_ref : (N*H, W*C)     f32   unpadded input, residual path (exact f32)
    t*_ref   : (3*W*C, W*C)   bf16  row-band Toeplitz conv weights
    g*_ref   : (1, C)         f32   BN gamma
    b*_ref   : (1, C)         f32   BN beta
    sel_ref  : (C, W*C)       f32   0/1 channel-selection matrix
    out_ref  : (N*H, W*C)     f32   output, lane-dense
    pad_scr  : (N, HP, W*C)   bf16  row-padded restage scratch for out1
                                    (HP = H+2 rounded to the bf16 sublane 16)
    """
    N, HP2, WC = xpad_ref.shape
    H = HP2 - 2
    NH = N * H
    C = g1_ref.shape[-1]
    W = WC // C
    inv_count = 1.0 / float(N * H * W)

    def conv_rows(src_ref, t_ref):
        # im2col over rows only (column padding is folded into t_ref):
        # LHS (NH, 3*WC) bf16, single wide-K MXU dot -> (NH, WC) f32.
        # (Single K=3*WC dot kept: best on v5e/v6e MRF; a 3-dot MRB-accumulate
        #  variant is a v7x-only micro-opt.)
        bands = [src_ref[:, dy:dy + H, :].reshape(NH, WC) for dy in range(3)]
        lhs = jnp.concatenate(bands, axis=-1)
        return jnp.dot(lhs, t_ref[...], preferred_element_type=jnp.float32)

    def bn_scale_shift(y, g_ref, b_ref):
        # Training-mode BatchNorm2d (biased variance), fused single stats pass:
        # per-(w,c) sums via one sublane reduction, folded to per-channel via a
        # tiny selection matmul; returns lane-expanded (1, WC) scale/shift.
        # (Single-pass E[y^2]-mean^2 form: adequate at these magnitudes.)
        col = jnp.concatenate(
            [jnp.sum(y, axis=0, keepdims=True),
             jnp.sum(y * y, axis=0, keepdims=True)], axis=0)          # (2, WC)
        ch = lax.dot_general(col, sel_ref[...],
                             (((1,), (1,)), ((), ())),
                             preferred_element_type=jnp.float32)      # (2, C)
        mean = ch[0:1, :] * inv_count
        var = ch[1:2, :] * inv_count - mean * mean
        scale = g_ref[...] * lax.rsqrt(var + EPS)                     # (1, C)
        shift = b_ref[...] - mean * scale                             # (1, C)
        ss = jnp.concatenate([scale, shift], axis=0)                  # (2, C)
        rows = lax.dot_general(ss, sel_ref[...],
                               (((1,), (0,)), ((), ())),
                               preferred_element_type=jnp.float32)    # (2, WC)
        return rows[0:1, :], rows[1:2, :]

    # conv1 -> bn1 -> relu  (conv1 reads the pre-padded bf16 input directly:
    # no staging copy, no in-kernel casts)
    y1 = conv_rows(xpad_ref, t1_ref)
    s1, h1 = bn_scale_shift(y1, g1_ref, b1_ref)
    out1 = jnp.maximum(y1 * s1 + h1, 0.0)                             # (NH, WC) f32

    # Restage out1 into the bf16 row-padded scratch: zero only the 2 halo rows,
    # write the interior exactly once (cast once on write).
    zero_row = jnp.zeros((N, 1, WC), jnp.bfloat16)
    pad_scr[:, 0:1, :] = zero_row
    pad_scr[:, H + 1:H + 2, :] = zero_row
    pad_scr[:, 1:H + 1, :] = out1.reshape(N, H, WC).astype(jnp.bfloat16)

    # conv2 -> bn2 -> +residual (exact f32) -> relu
    # TODO(synk): downsample path (needed only for stride != 1 or
    # inplanes != planes) is not implemented; this config uses downsample=None.
    y2 = conv_rows(pad_scr, t2_ref)
    s2, h2 = bn_scale_shift(y2, g2_ref, b2_ref)
    out_ref[...] = jnp.maximum(y2 * s2 + h2 + xres_ref[...], 0.0)


def _toeplitz(w_hwio, width):
    """(3,3,Cin,Cout) HWIO weight -> (3*width*Cin, width*Cout) row-band matrix.

    Row ordering (dy, xw, ci), column ordering (w, co); out-of-range column
    taps (the padding=1 columns) are dropped, so only row padding is needed.
    """
    kh, kw, cin, cout = w_hwio.shape
    eye_bands = jnp.stack(
        [jnp.eye(width, k=1 - dx, dtype=w_hwio.dtype) for dx in range(kw)])
    t = jnp.einsum('kxw,ykio->yxiwo', eye_bands, w_hwio)   # (3, W, Cin, W, Cout)
    return t.reshape(kh * width * cin, width * cout)


def _round_up(v, m):
    return -(-v // m) * m


def _vmem_footprint(bufs):
    """Sum of VMEM bytes with last-two-dim tile rounding per dtype."""
    total = 0
    for shape, dtype in bufs:
        itemsize = jnp.dtype(dtype).itemsize
        sub = {4: 8, 2: 16, 1: 32}.get(itemsize, 8)
        dims = list(shape)
        if len(dims) >= 2:
            dims[-1] = _round_up(dims[-1], 128)
            dims[-2] = _round_up(dims[-2], sub)
        elif len(dims) == 1:
            dims[-1] = _round_up(dims[-1], 128)
        total += int(np.prod(dims)) * itemsize
    return total


def basic_block_rows(x_rows, w1, g1, b1, w2, g2, b2):
    """Kernel-native entry point: lane-dense (N, H, W*C) in -> (N, H, W*C) out.

    Use this form to chain consecutive BasicBlocks without NCHW relayouts.
    """
    N, H, WC = x_rows.shape
    cin, cout = w1.shape[2], w1.shape[3]
    assert cin == cout and w2.shape[2] == w2.shape[3] == cout, (
        "BasicBlock with downsample=None requires inplanes == planes")
    C = cout
    W = WC // C
    assert W * C == WC
    NH = N * H

    # Pre-pad (1 zero row top/bottom) + cast to bf16 in the wrapper; XLA fuses
    # this with the preceding op, so the kernel needs no conv1 staging copy.
    x_pad = jnp.pad(x_rows.astype(jnp.float32),
                    ((0, 0), (1, 1), (0, 0))).astype(jnp.bfloat16)
    x_res = x_rows.reshape(NH, WC).astype(jnp.float32)

    t1 = _toeplitz(w1.astype(jnp.float32), W).astype(jnp.bfloat16)
    t2 = _toeplitz(w2.astype(jnp.float32), W).astype(jnp.bfloat16)
    sel = jnp.tile(jnp.eye(C, dtype=jnp.float32), (1, W))        # (C, W*C)

    g1r = g1.reshape(1, -1).astype(jnp.float32)
    b1r = b1.reshape(1, -1).astype(jnp.float32)
    g2r = g2.reshape(1, -1).astype(jnp.float32)
    b2r = b2.reshape(1, -1).astype(jnp.float32)

    HP = _round_up(H + 2, 16)   # bf16 sublane multiple -> explicit padding

    # Tight, computed VMEM budget (declared buffers, tile-rounded) + headroom
    # for in-kernel temporaries (im2col LHS, f32 conv outputs).
    bufs = [
        (x_pad.shape, jnp.bfloat16), (x_res.shape, jnp.float32),
        (t1.shape, jnp.bfloat16), (t2.shape, jnp.bfloat16),
        (g1r.shape, jnp.float32), (b1r.shape, jnp.float32),
        (g2r.shape, jnp.float32), (b2r.shape, jnp.float32),
        (sel.shape, jnp.float32),
        ((NH, WC), jnp.float32),                 # output
        ((N, HP, WC), jnp.bfloat16),             # scratch
    ]
    footprint = _vmem_footprint(bufs)
    vmem_limit = max(4 * footprint + (1 << 20), 4 << 20)

    flops = 2 * 2 * NH * (3 * WC) * WC           # two wide-K MXU contractions
    bytes_accessed = (x_pad.size * 2 + x_res.size * 4
                      + (t1.size + t2.size) * 2 + sel.size * 4
                      + 4 * C * 4 + NH * WC * 4)

    out_flat = pl.pallas_call(
        basic_block_kernel,
        out_shape=jax.ShapeDtypeStruct((NH, WC), jnp.float32),
        in_specs=[pl.BlockSpec(memory_space=pltpu.MemorySpace.VMEM)] * 9,
        out_specs=pl.BlockSpec(memory_space=pltpu.MemorySpace.VMEM),
        scratch_shapes=[pltpu.VMEM((N, HP, WC), jnp.bfloat16)],
        compiler_params=pltpu.CompilerParams(vmem_limit_bytes=int(vmem_limit)),
        cost_estimate=pl.CostEstimate(flops=int(flops),
                                      transcendentals=2 * C,
                                      bytes_accessed=int(bytes_accessed)),
    )(x_pad, x_res, t1, g1r, b1r, t2, g2r, b2r, sel)

    return out_flat.reshape(N, H, WC)


def basic_block(x_nchw, w1, g1, b1, w2, g2, b2):
    """NCHW adapter around the kernel-native lane-dense form."""
    N, C, H, W = x_nchw.shape
    x_rows = jnp.transpose(x_nchw, (0, 2, 3, 1)).astype(jnp.float32) \
                .reshape(N, H, W * C)
    out_rows = basic_block_rows(x_rows, w1, g1, b1, w2, g2, b2)
    Cout = w1.shape[-1]
    return jnp.transpose(out_rows.reshape(N, H, W, Cout), (0, 3, 1, 2))


def basic_block_reference(x_nchw, w1, g1, b1, w2, g2, b2):
    """Pure-JAX f32 reference with identical semantics."""
    x = jnp.transpose(x_nchw, (0, 2, 3, 1)).astype(jnp.float32)

    def conv(x, w):
        return lax.conv_general_dilated(
            x, w, window_strides=(1, 1), padding=((1, 1), (1, 1)),
            dimension_numbers=("NHWC", "HWIO", "NHWC"),
            precision=lax.Precision.HIGHEST)

    def bn(x, g, b):
        m = x.mean(axis=(0, 1, 2), keepdims=True)
        v = ((x - m) ** 2).mean(axis=(0, 1, 2), keepdims=True)
        return (x - m) * lax.rsqrt(v + EPS) * g + b

    out = jnp.maximum(bn(conv(x, w1), g1, b1), 0.0)
    out = bn(conv(out, w2), g2, b2)
    out = jnp.maximum(out + x, 0.0)
    return jnp.transpose(out, (0, 3, 1, 2))


if __name__ == "__main__":
    # inplanes = planes = 8, stride = 1; W * C = 128 -> fully lane-dense tiles.
    N, C, H, W = 2, 8, 16, 16

    key = jax.random.PRNGKey(0)
    kx, kw1, kw2, kg1, kb1, kg2, kb2 = jax.random.split(key, 7)

    x = jax.random.normal(kx, (N, C, H, W), jnp.float32)            # NCHW input
    w1 = 0.1 * jax.random.normal(kw1, (3, 3, C, C), jnp.float32)    # HWIO
    w2 = 0.1 * jax.random.normal(kw2, (3, 3, C, C), jnp.float32)
    g1 = 1.0 + 0.1 * jax.random.normal(kg1, (C,), jnp.float32)
    b1 = 0.1 * jax.random.normal(kb1, (C,), jnp.float32)
    g2 = 1.0 + 0.1 * jax.random.normal(kg2, (C,), jnp.float32)
    b2 = 0.1 * jax.random.normal(kb2, (C,), jnp.float32)

    out = jax.block_until_ready(jax.jit(basic_block)(x, w1, g1, b1, w2, g2, b2))
    ref = jax.block_until_ready(basic_block_reference(x, w1, g1, b1, w2, g2, b2))

    # Tolerance reflects bf16 MXU operands applied twice in series (conv1 input
    # and the restaged out1) with f32 accumulation, vs the f32 HIGHEST-precision
    # reference. This is intentional.
    np.testing.assert_allclose(np.asarray(out), np.asarray(ref),
                               rtol=2e-2, atol=2e-2)

    print("KERNEL_OK")
</pallas_src>

<mosaic_0001>
module attributes {stable_mosaic.version = 11 : i64} {
  func.func @basic_block_kernel(%arg0: memref<2x18x128xbf16, #tpu.memory_space<vmem>>, %arg1: memref<32x128xf32, #tpu.memory_space<vmem>>, %arg2: memref<384x128xbf16, #tpu.memory_space<vmem>>, %arg3: memref<1x8xf32, #tpu.memory_space<vmem>>, %arg4: memref<1x8xf32, #tpu.memory_space<vmem>>, %arg5: memref<384x128xbf16, #tpu.memory_space<vmem>>, %arg6: memref<1x8xf32, #tpu.memory_space<vmem>>, %arg7: memref<1x8xf32, #tpu.memory_space<vmem>>, %arg8: memref<8x128xf32, #tpu.memory_space<vmem>>, %arg9: memref<32x128xf32, #tpu.memory_space<vmem>>, %arg10: memref<2x32x128xbf16, #tpu.memory_space<vmem>>) attributes {dimension_semantics = [], scalar_prefetch = 0 : i64, scratch_operands = 1 : i64, tpu.core_type = #tpu.core_type<tc>} {
    %c0 = arith.constant 0 : index
    %c0_0 = arith.constant 0 : index
    %c0_1 = arith.constant 0 : index
    %0 = vector.load %arg0[%c0, %c0_0, %c0_1] : memref<2x18x128xbf16, #tpu.memory_space<vmem>>, vector<2x16x128xbf16>
    %1 = vector.shape_cast %0 : vector<2x16x128xbf16> to vector<32x128xbf16>
    %c0_2 = arith.constant 0 : index
    %c1 = arith.constant 1 : index
    %c0_3 = arith.constant 0 : index
    %2 = vector.load %arg0[%c0_2, %c1, %c0_3] : memref<2x18x128xbf16, #tpu.memory_space<vmem>>, vector<2x16x128xbf16>
    %3 = vector.shape_cast %2 : vector<2x16x128xbf16> to vector<32x128xbf16>
    %c0_4 = arith.constant 0 : index
    %c2 = arith.constant 2 : index
    %c0_5 = arith.constant 0 : index
    %4 = vector.load %arg0[%c0_4, %c2, %c0_5] : memref<2x18x128xbf16, #tpu.memory_space<vmem>>, vector<2x16x128xbf16>
    %5 = vector.shape_cast %4 : vector<2x16x128xbf16> to vector<32x128xbf16>
    %6 = tpu.concatenate %1, %3, %5 in 1 : vector<32x128xbf16>, vector<32x128xbf16>, vector<32x128xbf16> -> vector<32x384xbf16>
    %c0_6 = arith.constant 0 : index
    %c0_7 = arith.constant 0 : index
    %7 = vector.load %arg2[%c0_6, %c0_7] : memref<384x128xbf16, #tpu.memory_space<vmem>>, vector<384x128xbf16>
    %cst = arith.constant dense<0.000000e+00> : vector<32x128xf32>
    %8 = tpu.matmul %6, %7, %cst {dimension_numbers = #tpu.dot_dimension_numbers<[1], [0], [0], [1], [0, 0, 1, 1], [], []>} : vector<32x384xbf16>, vector<384x128xbf16>, vector<32x128xf32> -> vector<32x128xf32>
    %cst_8 = arith.constant dense<0.000000e+00> : vector<128xf32>
    %9 = vector.multi_reduction <add>, %8, %cst_8 [0] : vector<32x128xf32> to vector<128xf32>
    %10 = vector.shape_cast %9 : vector<128xf32> to vector<1x128xf32>
    %11 = arith.mulf %8, %8 : vector<32x128xf32>
    %cst_9 = arith.constant dense<0.000000e+00> : vector<128xf32>
    %12 = vector.multi_reduction <add>, %11, %cst_9 [0] : vector<32x128xf32> to vector<128xf32>
    %13 = vector.shape_cast %12 : vector<128xf32> to vector<1x128xf32>
    %14 = tpu.concatenate %10, %13 in 0 : vector<1x128xf32>, vector<1x128xf32> -> vector<2x128xf32>
    %c0_10 = arith.constant 0 : index
    %c0_11 = arith.constant 0 : index
    %15 = vector.load %arg8[%c0_10, %c0_11] : memref<8x128xf32, #tpu.memory_space<vmem>>, vector<8x128xf32>
    %cst_12 = arith.constant dense<0.000000e+00> : vector<2x8xf32>
    %16 = tpu.matmul %14, %15, %cst_12 {dimension_numbers = #tpu.dot_dimension_numbers<[1], [1], [0], [0], [0, 0, 1, 0], [], []>} : vector<2x128xf32>, vector<8x128xf32>, vector<2x8xf32> -> vector<2x8xf32>
    %17 = vector.extract_strided_slice %16 {offsets = [0, 0], sizes = [1, 8], strides = [1, 1]} : vector<2x8xf32> to vector<1x8xf32>
    %cst_13 = arith.constant 0.001953125 : f32
    %18 = vector.broadcast %cst_13 : f32 to vector<1x8xf32>
    %19 = arith.mulf %17, %18 : vector<1x8xf32>
    %20 = vector.extract_strided_slice %16 {offsets = [1, 0], sizes = [1, 8], strides = [1, 1]} : vector<2x8xf32> to vector<1x8xf32>
    %cst_14 = arith.constant 0.001953125 : f32
    %21 = vector.broadcast %cst_14 : f32 to vector<1x8xf32>
    %22 = arith.mulf %20, %21 : vector<1x8xf32>
    %23 = arith.mulf %19, %19 : vector<1x8xf32>
    %24 = arith.subf %22, %23 : vector<1x8xf32>
    %c0_15 = arith.constant 0 : index
    %c0_16 = arith.constant 0 : index
    %25 = vector.load %arg3[%c0_15, %c0_16] : memref<1x8xf32, #tpu.memory_space<vmem>>, vector<1x8xf32>
    %cst_17 = arith.constant 9.99999974E-6 : f32
    %26 = vector.broadcast %cst_17 : f32 to vector<1x8xf32>
    %27 = arith.addf %24, %26 : vector<1x8xf32>
    %28 = math.rsqrt %27 : vector<1x8xf32>
    %29 = arith.mulf %25, %28 : vector<1x8xf32>
    %c0_18 = arith.constant 0 : index
    %c0_19 = arith.constant 0 : index
    %30 = vector.load %arg4[%c0_18, %c0_19] : memref<1x8xf32, #tpu.memory_space<vmem>>, vector<1x8xf32>
    %31 = arith.mulf %19, %29 : vector<1x8xf32>
    %32 = arith.subf %30, %31 : vector<1x8xf32>
    %33 = tpu.concatenate %29, %32 in 0 : vector<1x8xf32>, vector<1x8xf32> -> vector<2x8xf32>
    %c0_20 = arith.constant 0 : index
    %c0_21 = arith.constant 0 : index
    %34 = vector.load %arg8[%c0_20, %c0_21] : memref<8x128xf32, #tpu.memory_space<vmem>>, vector<8x128xf32>
    %cst_22 = arith.constant dense<0.000000e+00> : vector<2x128xf32>
    %35 = tpu.matmul %33, %34, %cst_22 {dimension_numbers = #tpu.dot_dimension_numbers<[1], [0], [0], [1], [0, 0, 1, 1], [], []>} : vector<2x8xf32>, vector<8x128xf32>, vector<2x128xf32> -> vector<2x128xf32>
    %36 = vector.extract_strided_slice %35 {offsets = [0, 0], sizes = [1, 128], strides = [1, 1]} : vector<2x128xf32> to vector<1x128xf32>
    %37 = vector.extract_strided_slice %35 {offsets = [1, 0], sizes = [1, 128], strides = [1, 1]} : vector<2x128xf32> to vector<1x128xf32>
    %38 = vector.broadcast %36 : vector<1x128xf32> to vector<32x128xf32>
    %39 = arith.mulf %8, %38 : vector<32x128xf32>
    %40 = vector.broadcast %37 : vector<1x128xf32> to vector<32x128xf32>
    %41 = arith.addf %39, %40 : vector<32x128xf32>
    %cst_23 = arith.constant 0.000000e+00 : f32
    %42 = vector.broadcast %cst_23 : f32 to vector<32x128xf32>
    %43 = arith.maximumf %41, %42 : vector<32x128xf32>
    %cst_24 = arith.constant 0.000000e+00 : bf16
    %44 = vector.broadcast %cst_24 : bf16 to vector<2x1x128xbf16>
    %c0_25 = arith.constant 0 : index
    %c0_26 = arith.constant 0 : index
    %c0_27 = arith.constant 0 : index
    %45 = vector.load %arg10[%c0_25, %c0_26, %c0_27] : memref<2x32x128xbf16, #tpu.memory_space<vmem>>, vector<2x1x128xbf16>
    tpu.vector_store %arg10[%c0_25, %c0_26, %c0_27], %44 {strides = array<i32>} : memref<2x32x128xbf16, #tpu.memory_space<vmem>>, vector<2x1x128xbf16>,
    %c0_28 = arith.constant 0 : index
    %c17 = arith.constant 17 : index
    %c0_29 = arith.constant 0 : index
    %46 = vector.load %arg10[%c0_28, %c17, %c0_29] : memref<2x32x128xbf16, #tpu.memory_space<vmem>>, vector<2x1x128xbf16>
    tpu.vector_store %arg10[%c0_28, %c17, %c0_29], %44 {strides = array<i32>} : memref<2x32x128xbf16, #tpu.memory_space<vmem>>, vector<2x1x128xbf16>,
    %47 = vector.shape_cast %43 : vector<32x128xf32> to vector<2x16x128xf32>
    %48 = arith.truncf %47 : vector<2x16x128xf32> to vector<2x16x128xbf16>
    %c0_30 = arith.constant 0 : index
    %c1_31 = arith.constant 1 : index
    %c0_32 = arith.constant 0 : index
    %49 = vector.load %arg10[%c0_30, %c1_31, %c0_32] : memref<2x32x128xbf16, #tpu.memory_space<vmem>>, vector<2x16x128xbf16>
    tpu.vector_store %arg10[%c0_30, %c1_31, %c0_32], %48 {strides = array<i32>} : memref<2x32x128xbf16, #tpu.memory_space<vmem>>, vector<2x16x128xbf16>,
    %c0_33 = arith.constant 0 : index
    %c0_34 = arith.constant 0 : index
    %c0_35 = arith.constant 0 : index
    %50 = vector.load %arg10[%c0_33, %c0_34, %c0_35] : memref<2x32x128xbf16, #tpu.memory_space<vmem>>, vector<2x16x128xbf16>
    %51 = vector.shape_cast %50 : vector<2x16x128xbf16> to vector<32x128xbf16>
    %c0_36 = arith.constant 0 : index
    %c1_37 = arith.constant 1 : index
    %c0_38 = arith.constant 0 : index
    %52 = vector.load %arg10[%c0_36, %c1_37, %c0_38] : memref<2x32x128xbf16, #tpu.memory_space<vmem>>, vector<2x16x128xbf16>
    %53 = vector.shape_cast %52 : vector<2x16x128xbf16> to vector<32x128xbf16>
    %c0_39 = arith.constant 0 : index
    %c2_40 = arith.constant 2 : index
    %c0_41 = arith.constant 0 : index
    %54 = vector.load %arg10[%c0_39, %c2_40, %c0_41] : memref<2x32x128xbf16, #tpu.memory_space<vmem>>, vector<2x16x128xbf16>
    %55 = vector.shape_cast %54 : vector<2x16x128xbf16> to vector<32x128xbf16>
    %56 = tpu.concatenate %51, %53, %55 in 1 : vector<32x128xbf16>, vector<32x128xbf16>, vector<32x128xbf16> -> vector<32x384xbf16>
    %c0_42 = arith.constant 0 : index
    %c0_43 = arith.constant 0 : index
    %57 = vector.load %arg5[%c0_42, %c0_43] : memref<384x128xbf16, #tpu.memory_space<vmem>>, vector<384x128xbf16>
    %cst_44 = arith.constant dense<0.000000e+00> : vector<32x128xf32>
    %58 = tpu.matmul %56, %57, %cst_44 {dimension_numbers = #tpu.dot_dimension_numbers<[1], [0], [0], [1], [0, 0, 1, 1], [], []>} : vector<32x384xbf16>, vector<384x128xbf16>, vector<32x128xf32> -> vector<32x128xf32>
    %cst_45 = arith.constant dense<0.000000e+00> : vector<128xf32>
    %59 = vector.multi_reduction <add>, %58, %cst_45 [0] : vector<32x128xf32> to vector<128xf32>
    %60 = vector.shape_cast %59 : vector<128xf32> to vector<1x128xf32>
    %61 = arith.mulf %58, %58 : vector<32x128xf32>
    %cst_46 = arith.constant dense<0.000000e+00> : vector<128xf32>
    %62 = vector.multi_reduction <add>, %61, %cst_46 [0] : vector<32x128xf32> to vector<128xf32>
    %63 = vector.shape_cast %62 : vector<128xf32> to vector<1x128xf32>
    %64 = tpu.concatenate %60, %63 in 0 : vector<1x128xf32>, vector<1x128xf32> -> vector<2x128xf32>
    %c0_47 = arith.constant 0 : index
    %c0_48 = arith.constant 0 : index
    %65 = vector.load %arg8[%c0_47, %c0_48] : memref<8x128xf32, #tpu.memory_space<vmem>>, vector<8x128xf32>
    %cst_49 = arith.constant dense<0.000000e+00> : vector<2x8xf32>
    %66 = tpu.matmul %64, %65, %cst_49 {dimension_numbers = #tpu.dot_dimension_numbers<[1], [1], [0], [0], [0, 0, 1, 0], [], []>} : vector<2x128xf32>, vector<8x128xf32>, vector<2x8xf32> -> vector<2x8xf32>
    %67 = vector.extract_strided_slice %66 {offsets = [0, 0], sizes = [1, 8], strides = [1, 1]} : vector<2x8xf32> to vector<1x8xf32>
    %cst_50 = arith.constant 0.001953125 : f32
    %68 = vector.broadcast %cst_50 : f32 to vector<1x8xf32>
    %69 = arith.mulf %67, %68 : vector<1x8xf32>
    %70 = vector.extract_strided_slice %66 {offsets = [1, 0], sizes = [1, 8], strides = [1, 1]} : vector<2x8xf32> to vector<1x8xf32>
    %cst_51 = arith.constant 0.001953125 : f32
    %71 = vector.broadcast %cst_51 : f32 to vector<1x8xf32>
    %72 = arith.mulf %70, %71 : vector<1x8xf32>
    %73 = arith.mulf %69, %69 : vector<1x8xf32>
    %74 = arith.subf %72, %73 : vector<1x8xf32>
    %c0_52 = arith.constant 0 : index
    %c0_53 = arith.constant 0 : index
    %75 = vector.load %arg6[%c0_52, %c0_53] : memref<1x8xf32, #tpu.memory_space<vmem>>, vector<1x8xf32>
    %cst_54 = arith.constant 9.99999974E-6 : f32
    %76 = vector.broadcast %cst_54 : f32 to vector<1x8xf32>
    %77 = arith.addf %74, %76 : vector<1x8xf32>
    %78 = math.rsqrt %77 : vector<1x8xf32>
    %79 = arith.mulf %75, %78 : vector<1x8xf32>
    %c0_55 = arith.constant 0 : index
    %c0_56 = arith.constant 0 : index
    %80 = vector.load %arg7[%c0_55, %c0_56] : memref<1x8xf32, #tpu.memory_space<vmem>>, vector<1x8xf32>
    %81 = arith.mulf %69, %79 : vector<1x8xf32>
    %82 = arith.subf %80, %81 : vector<1x8xf32>
    %83 = tpu.concatenate %79, %82 in 0 : vector<1x8xf32>, vector<1x8xf32> -> vector<2x8xf32>
    %c0_57 = arith.constant 0 : index
    %c0_58 = arith.constant 0 : index
    %84 = vector.load %arg8[%c0_57, %c0_58] : memref<8x128xf32, #tpu.memory_space<vmem>>, vector<8x128xf32>
    %cst_59 = arith.constant dense<0.000000e+00> : vector<2x128xf32>
    %85 = tpu.matmul %83, %84, %cst_59 {dimension_numbers = #tpu.dot_dimension_numbers<[1], [0], [0], [1], [0, 0, 1, 1], [], []>} : vector<2x8xf32>, vector<8x128xf32>, vector<2x128xf32> -> vector<2x128xf32>
    %86 = vector.extract_strided_slice %85 {offsets = [0, 0], sizes = [1, 128], strides = [1, 1]} : vector<2x128xf32> to vector<1x128xf32>
    %87 = vector.extract_strided_slice %85 {offsets = [1, 0], sizes = [1, 128], strides = [1, 1]} : vector<2x128xf32> to vector<1x128xf32>
    %88 = vector.broadcast %86 : vector<1x128xf32> to vector<32x128xf32>
    %89 = arith.mulf %58, %88 : vector<32x128xf32>
    %90 = vector.broadcast %87 : vector<1x128xf32> to vector<32x128xf32>
    %91 = arith.addf %89, %90 : vector<32x128xf32>
    %c0_60 = arith.constant 0 : index
    %c0_61 = arith.constant 0 : index
    %92 = vector.load %arg1[%c0_60, %c0_61] : memref<32x128xf32, #tpu.memory_space<vmem>>, vector<32x128xf32>
    %93 = arith.addf %91, %92 : vector<32x128xf32>
    %cst_62 = arith.constant 0.000000e+00 : f32
    %94 = vector.broadcast %cst_62 : f32 to vector<32x128xf32>
    %95 = arith.maximumf %93, %94 : vector<32x128xf32>
    %c0_63 = arith.constant 0 : index
    %c0_64 = arith.constant 0 : index
    %96 = vector.load %arg9[%c0_63, %c0_64] : memref<32x128xf32, #tpu.memory_space<vmem>>, vector<32x128xf32>
    tpu.vector_store %arg9[%c0_63, %c0_64], %95 {strides = array<i32>} : memref<32x128xf32, #tpu.memory_space<vmem>>, vector<32x128xf32>,
    return
  }
}

</mosaic_0001>

<bundles_post_ra>
// kernel: tile.9
= control target key start
LH: loop header
LB: loop body
LE: loop exit
PB: predicated region body
PF: predicated region fallthrough
CT: control target
= control target key end

     0   :  { %vm6_vm0 = vcmask 1043458   ;;  %vm10_vm1 = vcmask 1045508   ;;  %vm14_vm2 = vcmask 1047558   ;;  %s19_s6 = smov 3  ;;  %s22_s7 = smov 12  ;;  %vm16_vm3 = vcmask 64512   ;;  %s736_s0 = inlined_call_operand.vmem [shape: f32[8,16,8], index: 0, kind: input, shape index: {}]   ;;  %s737_s1 = inlined_call_operand.vmem [shape: f32[8,128], index: 1, kind: output, shape index: {}]  }
   0x1   :  { %v348_v0 = vld [vmem:[%s736_s0 + $0xf] ss:$16 sm:%s19_s6]   ;;  %s27_s12 = smov 48  ;;  %s32_s13 = smov 192  ;;  %vm38_vm4 = vcmask 1048512   ;;  %vm60_vm5 = vcmask 982912  }
   0x2   :  { %v349_v1 = vld [vmem:[%s736_s0 + $0xf] ss:$16 sm:%s22_s7]   ;;  %s63_s18 = smov 3  ;;  %s66_s21 = smov 12  ;;  %vm82_vm6 = vcmask 917312   ;;  %vm104_vm7 = vcmask 851712  }
   0x3   :  { %v25_v2 = vsel %vm6_vm0, %v349_v1, %v348_v0  ;;  %v350_v3 = vld [vmem:[%s736_s0 + $0xf] ss:$16 sm:%s27_s12]   ;;  %v356_v6 = vld [vmem:[%s736_s0 + $0xd] ss:$16 sm:%s63_s18]   ;;  %s71_s22 = smov 48  ;;  %s76_s27 = smov 192 }
   0x4   :  { %v351_v4 = vld [vmem:[%s736_s0 + $0xf] ss:$16 sm:%s32_s13]   ;;  %v30_v5 = vsel %vm10_vm1, %v350_v3, %v25_v2  ;;  %v357_v8 = vld [vmem:[%s736_s0 + $0xd] ss:$16 sm:%s66_s21]   ;;  %s423_s28 = smov 120   ;;  %s41_s2 = smov 3 }
   0x5   :  { %v35_v7 = vsel %vm14_vm2, %v351_v4, %v30_v5  ;;  %v358_v9 = vld [vmem:[%s736_s0 + $0xd] ss:$16 sm:%s71_s22]   ;;  %v69_v10 = vsel %vm6_vm0, %v357_v8, %v356_v6  ;;  %s44_s3 = smov 12  ;;  %v352_v13 = vld [vmem:[%s736_s0 + $0xe] ss:$16 sm:%s41_s2]   ;;  %s49_s8 = smov 48 }
   0x6   :  { %36 = vrot.lane.b32.xlu0 %v35_v7, %s423_s28  ;;  %v359_v11 = vld [vmem:[%s736_s0 + $0xd] ss:$16 sm:%s76_s27]   ;;  %v74_v12 = vsel %vm10_vm1, %v358_v9, %v69_v10  ;;  %s54_s9 = smov 192  ;;  %s85_s14 = smov 3  ;;  %vm126_vm8 = vcmask 786112   ;;  %vm148_vm9 = vcmask 720512  }
   0x7   :  { %v353_v14 = vld [vmem:[%s736_s0 + $0xe] ss:$16 sm:%s44_s3]   ;;  %v79_v15 = vsel %vm14_vm2, %v359_v11, %v74_v12  ;;  %s424_s15 = smov 104   ;;  %v360_v20 = vld [vmem:[%s736_s0 + $0xc] ss:$16 sm:%s85_s14]   ;;  %s88_s18 = smov 12 }
   0x8   :  { %v47_v16 = vsel %vm6_vm0, %v353_v14, %v352_v13  ;;  %v354_v17 = vld [vmem:[%s736_s0 + $0xe] ss:$16 sm:%s49_s8]   ;;  %80 = vrot.lane.b32.xlu1 %v79_v15, %s424_s15  ;;  %s93_s19 = smov 48  ;;  %s98_s24 = smov 192  ;;  %vm170_vm10 = vcmask 654912   ;;  %vm192_vm11 = vcmask 589312  }
   0x9   :  { %v355_v18 = vld [vmem:[%s736_s0 + $0xe] ss:$16 sm:%s54_s9]   ;;  %v52_v19 = vsel %vm10_vm1, %v354_v17, %v47_v16  ;;  %v361_v21 = vld [vmem:[%s736_s0 + $0xc] ss:$16 sm:%s88_s18]   ;;  %s151_s27 = smov 3  ;;  %s154_s28 = smov 12 }
   0xa   :  { %v362_v22 = vld [vmem:[%s736_s0 + $0xc] ss:$16 sm:%s93_s19]   ;;  %v57_v23 = vsel %vm14_vm2, %v355_v18, %v52_v19  ;;  %v91_v24 = vsel %vm6_vm0, %v361_v21, %v360_v20  ;;  %v372_v27 = vld [vmem:[%s736_s0 + $0x9] ss:$16 sm:%s151_s27]   ;;  %s159_s4 = smov 48  ;;  %s164_s7 = smov 192 }
   0xb   :  { %v363_v25 = vld [vmem:[%s736_s0 + $0xc] ss:$16 sm:%s98_s24]   ;;  %v96_v26 = vsel %vm10_vm1, %v362_v22, %v91_v24  ;;  %v373_v28 = vld [vmem:[%s736_s0 + $0x9] ss:$16 sm:%s154_s28]   ;;  %s173_s8 = smov 3  ;;  %s425_s9 = smov 112  }
   0xc   :  { %v157_v29 = vsel %vm6_vm0, %v373_v28, %v372_v27  ;;  %v374_v30 = vld [vmem:[%s736_s0 + $0x9] ss:$16 sm:%s159_s4]   ;;  %v101_v31 = vsel %vm14_vm2, %v363_v25, %v96_v26  ;;  %v376_v32 = vld [vmem:[%s736_s0 + $0x8] ss:$16 sm:%s173_s8]   ;;  %s176_s12 = smov 12  ;;  %s181_s13 = smov 48 }
   0xd   :  { %v377_v33 = vld [vmem:[%s736_s0 + $0x8] ss:$16 sm:%s176_s12]   ;;  %s186_s16 = smov 192  ;;  %v162_v34 = vsel %vm10_vm1, %v374_v30, %v157_v29  ;;  %v375_v35 = vld [vmem:[%s736_s0 + $0x9] ss:$16 sm:%s164_s7]   ;;  %s217_s21 = smov 3 }
   0xe   :  { %58 = vrot.lane.b32.xlu0 %v57_v23, %s425_s9  ;;  %v179_v36 = vsel %vm6_vm0, %v377_v33, %v376_v32  ;;  %v378_v37 = vld [vmem:[%s736_s0 + $0x8] ss:$16 sm:%s181_s13]   ;;  %s220_s22 = smov 12  ;;  %s426_s23 = smov 96   ;;  %v167_v40 = vsel %vm14_vm2, %v375_v35, %v162_v34  ;;  %vm214_vm12 = vcmask 523712   ;;  %vm236_vm13 = vcmask 458112  }
   0xf   :  { %s225_s24 = smov 48  ;;  %v384_v38 = vld [vmem:[%s736_s0 + $0x6] ss:$16 sm:%s217_s21]   ;;  %s239_s29 = smov 3  ;;  %v184_v41 = vsel %vm10_vm1, %v378_v37, %v179_v36  ;;  %v379_v42 = vld [vmem:[%s736_s0 + $0x8] ss:$16 sm:%s186_s16]  }
  0x10   :  { %102 = vrot.lane.b32.xlu1 %v101_v31, %s426_s23  ;;  %v385_v39 = vld [vmem:[%s736_s0 + $0x6] ss:$16 sm:%s220_s22]   ;;  %s230_s3 = smov 192  ;;  %s242_s4 = smov 12  ;;  %v189_v47 = vsel %vm14_vm2, %v379_v42, %v184_v41  ;;  %vm258_vm14 = vcmask 392512   ;;  %vm280_vm15 = vcmask 326912  }
  0x11   :  { %v386_v43 = vld [vmem:[%s736_s0 + $0x6] ss:$16 sm:%s225_s24]   ;;  %s247_s7 = smov 48  ;;  %v223_v44 = vsel %vm6_vm0, %v385_v39, %v384_v38  ;;  %v388_v45 = vld [vmem:[%s736_s0 + $0x5] ss:$16 sm:%s239_s29]   ;;  %s107_s12 = smov 3 }
  0x12   :  { %v389_v46 = vld [vmem:[%s736_s0 + $0x5] ss:$16 sm:%s242_s4]   ;;  %s110_s13 = smov 12  ;;  %s427_s14 = smov 72   ;;  %v387_v48 = vld [vmem:[%s736_s0 + $0x6] ss:$16 sm:%s230_s3]   ;;  %v228_v52 = vsel %vm10_vm1, %v386_v43, %v223_v44 }
  0x13   :  { %v364_v49 = vld [vmem:[%s736_s0 + $0xb] ss:$16 sm:%s107_s12]   ;;  %s115_s19 = smov 48  ;;  %s120_s20 = smov 192  ;;  %v245_v53 = vsel %vm6_vm0, %v389_v46, %v388_v45  ;;  %v390_v54 = vld [vmem:[%s736_s0 + $0x5] ss:$16 sm:%s247_s7]   ;;  %v233_v61 = vsel %vm14_vm2, %v387_v48, %v228_v52 }
  0x14   :  { %s252_s21 = smov 192  ;;  %v365_v50 = vld [vmem:[%s736_s0 + $0xb] ss:$16 sm:%s110_s13]   ;;  %s283_s26 = smov 3  ;;  %v250_v62 = vsel %vm10_vm1, %v390_v54, %v245_v53 }
  0x15   :  { %v366_v51 = vld [vmem:[%s736_s0 + $0xb] ss:$16 sm:%s115_s19]   ;;  %v113_v55 = vsel %vm6_vm0, %v365_v50, %v364_v49  ;;  %s286_s2 = smov 12  ;;  %s428_s3 = smov 64   ;;  %v396_v59 = vld [vmem:[%s736_s0 + $0x3] ss:$16 sm:%s283_s26]  }
  0x16   :  { %168 = vrot.lane.b32.xlu0 %v167_v40, %s427_s14  ;;  %v367_v56 = vld [vmem:[%s736_s0 + $0xb] ss:$16 sm:%s120_s20]   ;;  %v118_v57 = vsel %vm10_vm1, %v366_v51, %v113_v55  ;;  %s291_s4 = smov 48  ;;  %s305_s9 = smov 3 }
  0x17   :  { %v123_v58 = vsel %vm14_vm2, %v367_v56, %v118_v57  ;;  %v397_v60 = vld [vmem:[%s736_s0 + $0x3] ss:$16 sm:%s286_s2]   ;;  %s308_s10 = smov 12  ;;  %v391_v63 = vld [vmem:[%s736_s0 + $0x5] ss:$16 sm:%s252_s21]   ;;  %s429_s13 = smov 88  }
  0x18   :  { %190 = vrot.lane.b32.xlu1 %v189_v47, %s428_s3  ;;  %124 = vrot.lane.b32.xlu2 %v123_v58, %s429_s13  ;;  %s296_s14 = smov 192  ;;  %s313_s15 = smov 48  ;;  %v398_v0 = vld [vmem:[%s736_s0 + $0x3] ss:$16 sm:%s291_s4]   ;;  %v289_v2 = vsel %vm6_vm0, %v397_v60, %v396_v59  ;;  %v255_v5 = vsel %vm14_vm2, %v391_v63, %v250_v62 }
  0x19   :  { %v400_v1 = vld [vmem:[%s736_s0 + $0x2] ss:$16 sm:%s305_s9]   ;;  %s129_s20 = smov 3  ;;  %s132_s25 = smov 12  ;;  %v399_v6 = vld [vmem:[%s736_s0 + $0x3] ss:$16 sm:%s296_s14]   ;;  %v294_v12 = vsel %vm10_vm1, %v398_v0, %v289_v2 }
  0x1a   :  { %v401_v3 = vld [vmem:[%s736_s0 + $0x2] ss:$16 sm:%s308_s10]   ;;  %v368_v4 = vld [vmem:[%s736_s0 + $0xa] ss:$16 sm:%s129_s20]   ;;  %s137_s26 = smov 48  ;;  %s430_s27 = smov 48   ;;  %v299_v20 = vsel %vm14_vm2, %v399_v6, %v294_v12 }
  0x1b   :  { %v402_v7 = vld [vmem:[%s736_s0 + $0x2] ss:$16 sm:%s313_s15]   ;;  %s318_s3 = smov 192  ;;  %v369_v8 = vld [vmem:[%s736_s0 + $0xa] ss:$16 sm:%s132_s25]   ;;  %s142_s6 = smov 192  ;;  %v311_v13 = vsel %vm6_vm0, %v401_v3, %v400_v1 }
  0x1c   :  { %v135_v9 = vsel %vm6_vm0, %v369_v8, %v368_v4  ;;  %v370_v10 = vld [vmem:[%s736_s0 + $0xa] ss:$16 sm:%s137_s26]   ;;  %s195_s11 = smov 3  ;;  %s198_s12 = smov 12  ;;  %v316_v21 = vsel %vm10_vm1, %v402_v7, %v311_v13  ;;  %v403_v22 = vld [vmem:[%s736_s0 + $0x2] ss:$16 sm:%s318_s3]  }
  0x1d   :  { %v371_v11 = vld [vmem:[%s736_s0 + $0xa] ss:$16 sm:%s142_s6]   ;;  %v140_v14 = vsel %vm10_vm1, %v370_v10, %v135_v9  ;;  %v380_v15 = vld [vmem:[%s736_s0 + $0x7] ss:$16 sm:%s195_s11]   ;;  %s203_s17 = smov 48  ;;  %s431_s18 = smov 40   ;;  %v321_v25 = vsel %vm14_vm2, %v403_v22, %v316_v21 }
  0x1e   :  { %234 = vrot.lane.b32.xlu0 %v233_v61, %s430_s27  ;;  %v381_v16 = vld [vmem:[%s736_s0 + $0x7] ss:$16 sm:%s198_s12]   ;;  %v145_v17 = vsel %vm14_vm2, %v371_v11, %v140_v14  ;;  %s208_s21 = smov 192  ;;  %s432_s24 = smov 80  }
  0x1f   :  { %v201_v18 = vsel %vm6_vm0, %v381_v16, %v380_v15  ;;  %v382_v19 = vld [vmem:[%s736_s0 + $0x7] ss:$16 sm:%s203_s17]   ;;  %s261_s25 = smov 3  ;;  %s264_s26 = smov 12 }
  0x20   :  { %256 = vrot.lane.b32.xlu1 %v255_v5, %s431_s18  ;;  %146 = vrot.lane.b32.xlu2 %v145_v17, %s432_s24  ;;  %v206_v23 = vsel %vm10_vm1, %v382_v19, %v201_v18  ;;  %v383_v24 = vld [vmem:[%s736_s0 + $0x7] ss:$16 sm:%s208_s21]   ;;  %s433_s29 = smov 24   ;;  %s269_s5 = smov 48 }
  0x21   :  { %v392_v26 = vld [vmem:[%s736_s0 + $0x4] ss:$16 sm:%s261_s25]   ;;  %v211_v28 = vsel %vm14_vm2, %v383_v24, %v206_v23  ;;  %s434_s6 = smov 16   ;;  %s274_s9 = smov 192 }
  0x22   :  { %v393_v27 = vld [vmem:[%s736_s0 + $0x4] ss:$16 sm:%s264_s26]   ;;  %s435_s10 = smov 56   ;;  %s327_s11 = smov 3 }
  0x23   :  { %v267_v29 = vsel %vm6_vm0, %v393_v27, %v392_v26  ;;  %v394_v30 = vld [vmem:[%s736_s0 + $0x4] ss:$16 sm:%s269_s5]   ;;  %s330_s12 = smov 12  ;;  %v404_v33 = vld [vmem:[%s736_s0 + $0x1] ss:$16 sm:%s327_s11]   ;;  %s335_s19 = smov 48 }
  0x24   :  { %v272_v31 = vsel %vm10_vm1, %v394_v30, %v267_v29  ;;  %v395_v32 = vld [vmem:[%s736_s0 + $0x4] ss:$16 sm:%s274_s9]   ;;  %v405_v34 = vld [vmem:[%s736_s0 + $0x1] ss:$16 sm:%s330_s12]   ;;  %s340_s22 = smov 192  ;;  %s436_s23 = smov 32  }
  0x25   :  { %v277_v35 = vsel %vm14_vm2, %v395_v32, %v272_v31  ;;  %v333_v36 = vsel %vm6_vm0, %v405_v34, %v404_v33  ;;  %v406_v37 = vld [vmem:[%s736_s0 + $0x1] ss:$16 sm:%s335_s19]   ;;  %s437_s26 = smov 8   ;;  %s2_s27 = smov 3 }
  0x26   :  { %300 = vrot.lane.b32.xlu0 %v299_v20, %s433_s29  ;;  %v338_v38 = vsel %vm10_vm1, %v406_v37, %v333_v36  ;;  %v407_v39 = vld [vmem:[%s736_s0 + $0x1] ss:$16 sm:%s340_s22]   ;;  %s4_s28 = smov 12  ;;  %s8_s29 = smov 48 }
  0x27   :  { %v343_v40 = vsel %vm14_vm2, %v407_v39, %v338_v38  ;;  %s12_s30 = smov 192  ;;  %v3_v41 = vld [vmem:[%s736_s0] ss:$16 sm:%s2_s27]  }
  0x28   :  { %322 = vrot.lane.b32.xlu1 %v321_v25, %s434_s6  ;;  %212 = vrot.lane.b32.xlu2 %v211_v28, %s435_s10  ;;  %v5_v42 = vld [vmem:[%s736_s0] ss:$16 sm:%s4_s28]  }
  0x29   :  { %v7_v43 = vsel %vm6_vm0, %v5_v42, %v3_v41  ;;  %v9_v44 = vld [vmem:[%s736_s0] ss:$16 sm:%s8_s29]   ;;  %vm302_vm0 = vcmask 261312  }
  0x2a   :  { %v11_v45 = vsel %vm10_vm1, %v9_v44, %v7_v43  ;;  %v13_v46 = vld [vmem:[%s736_s0] ss:$16 sm:%s12_s30]   ;;  %vm324_vm1 = vcmask 195712  }
  0x2b   :  { %v15_v47 = vsel %vm14_vm2, %v13_v46, %v11_v45  ;;  %vm346_vm2 = vcmask 130112  }
  0x2c   :  { %17 = vst.msk [vmem:[%s737_s1] sm:$0xff] %vm16_vm3, %v15_v47  }
  0x30   :  { %278 = vrot.lane.b32.xlu2 %v277_v35, %s436_s23 }
  0x38   :  { %344 = vrot.lane.b32.xlu2 %v343_v40, %s437_s26 }
  0x72   :  { %v125_v48 = vpop.permute.xlu2 %124  }
  0x78   :  { %v37_v49 = vpop.permute.xlu0 %36  }
  0x79   :  { %39 = vst.msk [vmem:[%s737_s1] sm:$0xff] %vm38_vm4, %v37_v49  }
  0x7a   :  { %v81_v50 = vpop.permute.xlu1 %80   ;;  %v147_v51 = vpop.permute.xlu2 %146  }
  0x80   :  { %v59_v52 = vpop.permute.xlu0 %58  }
  0x81   :  { %61 = vst.msk [vmem:[%s737_s1] sm:$0xff] %vm60_vm5, %v59_v52  }
  0x82   :  { %83 = vst.msk [vmem:[%s737_s1] sm:$0xff] %vm82_vm6, %v81_v50   ;;  %v103_v53 = vpop.permute.xlu1 %102   ;;  %v213_v54 = vpop.permute.xlu2 %212  }
  0x83   :  { %105 = vst.msk [vmem:[%s737_s1] sm:$0xff] %vm104_vm7, %v103_v53  }
  0x84   :  { %127 = vst.msk [vmem:[%s737_s1] sm:$0xff] %vm126_vm8, %v125_v48  }
  0x85   :  { %149 = vst.msk [vmem:[%s737_s1] sm:$0xff] %vm148_vm9, %v147_v51  }
  0x88   :  { %v169_v55 = vpop.permute.xlu0 %168  }
  0x89   :  { %171 = vst.msk [vmem:[%s737_s1] sm:$0xff] %vm170_vm10, %v169_v55  }
  0x8a   :  { %v191_v56 = vpop.permute.xlu1 %190   ;;  %v279_v57 = vpop.permute.xlu2 %278  }
  0x8b   :  { %193 = vst.msk [vmem:[%s737_s1] sm:$0xff] %vm192_vm11, %v191_v56  }
  0x8c   :  { %215 = vst.msk [vmem:[%s737_s1] sm:$0xff] %vm214_vm12, %v213_v54  }
  0x90   :  { %v235_v58 = vpop.permute.xlu0 %234  }
  0x91   :  { %237 = vst.msk [vmem:[%s737_s1] sm:$0xff] %vm236_vm13, %v235_v58  }
  0x92   :  { %v257_v59 = vpop.permute.xlu1 %256   ;;  %v345_v60 = vpop.permute.xlu2 %344  }
  0x93   :  { %259 = vst.msk [vmem:[%s737_s1] sm:$0xff] %vm258_vm14, %v257_v59  }
  0x94   :  { %281 = vst.msk [vmem:[%s737_s1] sm:$0xff] %vm280_vm15, %v279_v57  }
  0x98   :  { %v301_v61 = vpop.permute.xlu0 %300  }
  0x99   :  { %303 = vst.msk [vmem:[%s737_s1] sm:$0xff] %vm302_vm0, %v301_v61  }
  0x9a   :  { %v323_v62 = vpop.permute.xlu1 %322  }
  0x9b   :  { %325 = vst.msk [vmem:[%s737_s1] sm:$0xff] %vm324_vm1, %v323_v62  }
  0x9c   :  { %347 = vst.msk [vmem:[%s737_s1] sm:$0xff] %vm346_vm2, %v345_v60  }

// kernel: basic_block.1
= control target key start
LH: loop header
LB: loop body
LE: loop exit
PB: predicated region body
PF: predicated region fallthrough
CT: control target
= control target key end

     0   :  { %vm39_vm0 = vsmask.f32 3328  ;;  %vm40_vm1 = vsmask.f32 7440  ;;  %vm98_vm2 = vcmask 1042432   ;;  %vm99_vm3 = vcmask 1046532   ;;  %s1739_s2 = inlined_call_operand.vmem [shape: bf16[384,128], index: 2, kind: input, shape index: {}]   ;;  %s1740_s0 = inlined_call_operand.vmem [shape: bf16[2,18,128], index: 0, kind: input, shape index: {}]   ;;  %s1741_s8 = inlined_call_operand.vmem [shape: f32[8,128], index: 8, kind: input, shape index: {}]   ;;  %s1742_s5 = inlined_call_operand.vmem [shape: bf16[384,128], index: 5, kind: input, shape index: {}]   ;;  %s1743_s3 = inlined_call_operand.vmem [shape: f32[1,8], index: 3, kind: input, shape index: {}]   ;;  %s1744_s4 = inlined_call_operand.vmem [shape: f32[1,8], index: 4, kind: input, shape index: {}]   ;;  %s1745_s6 = inlined_call_operand.vmem [shape: f32[1,8], index: 6, kind: input, shape index: {}]   ;;  %s1746_s7 = inlined_call_operand.vmem [shape: f32[1,8], index: 7, kind: input, shape index: {}]   ;;  %s1747_s1 = inlined_call_operand.vmem [shape: f32[32,128], index: 1, kind: input, shape index: {}]   ;;  %s1748_s9 = inlined_call_operand.vmem [shape: f32[32,128], index: 9, kind: output, shape index: {}]  }
   0x1   :  { %v1285_v0 = vld [vmem:[%s1739_s2 + $0x38] sm:$0xff]  ;;  %v1284_v3 = vld [vmem:[%s1739_s2 + $0x30] sm:$0xff]  ;;  %v1283_v6 = vld [vmem:[%s1739_s2 + $0x28] sm:$0xff]  ;;  %vm412_vm6 = vcmask 1040384   ;;  %vm505_vm7 = vsmask.f32 256 }
   0x2   :  { %v1293_v1 = vld [vmem:[%s1739_s2 + $0x78] sm:$0xff]  ;;  %333 = vmatpush.bf16.msra.mxu0 %v1285_v0  ;;  %v1292_v4 = vld [vmem:[%s1739_s2 + $0x70] sm:$0xff]  ;;  %v1291_v7 = vld [vmem:[%s1739_s2 + $0x68] sm:$0xff]  ;;  %vm513_vm9 = vsmask.f32 7938  ;;  %vm466_vm14 = vcmask 64512  }
   0x3   :  { %v1301_v2 = vld [vmem:[%s1739_s2 + $0xb8] sm:$0xff]  ;;  %352 = vmatpush.bf16.msra.mxu1 %v1293_v1  ;;  %v1300_v5 = vld [vmem:[%s1739_s2 + $0xb0] sm:$0xff]  ;;  %v1299_v8 = vld [vmem:[%s1739_s2 + $0xa8] sm:$0xff]  ;;  %vm525_vm15 = vsmask.f32 4368 }
   0x4   :  { %371 = vmatpush.bf16.msra.mxu2 %v1301_v2  ;;  %v33_v9 = vld [vmem:[%s1740_s0] sm:$0xf]  ;;  %v34_v10 = vld [vmem:[%s1740_s0 + $0x4] sm:$0xf]  ;;  %v37_v18 = vld [vmem:[%s1740_s0 + $0x8] sm:$0x1] }
   0x5   :  { %v43_v11 = vshrl.u32 %v33_v9, 16  ;;  %v46_v12 = vshll.u32 %v33_v9, 16  ;;  %v52_v13 = vshll.u32 %v34_v10, 16  ;;  %v56_v14 = vshrl.u32 %v34_v10, 16  ;;  %v1282_v15 = vld [vmem:[%s1739_s2 + $0x20] sm:$0xff]  ;;  %v1281_v23 = vld [vmem:[%s1739_s2 + $0x18] sm:$0xff]  ;;  %vm1457_vm4 = vmor %vm39_vm0, %vm40_vm1 }
   0x6   :  { %334 = vmatpush.bf16.msra.mxu0 %v1284_v3  ;;  %v1290_v16 = vld [vmem:[%s1739_s2 + $0x60] sm:$0xff]  ;;  %v1289_v24 = vld [vmem:[%s1739_s2 + $0x58] sm:$0xff]  ;;  %v62_v27 = vshll.u32 %v37_v18, 16  ;;  %v103_v30 = vrot.slane %v34_v10, 5  ;;  %v1280_v31 = vld [vmem:[%s1739_s2 + $0x10] sm:$0xff]  ;;  %v106_v43 = vrot.slane %v37_v18, 5 }
   0x7   :  { %353 = vmatpush.bf16.msra.mxu1 %v1292_v4  ;;  %v1298_v17 = vld [vmem:[%s1739_s2 + $0xa0] sm:$0xff]  ;;  %v45_v19 = vrot.slane %v43_v11, 4  ;;  %v48_v20 = vrot.slane %v46_v12, 5  ;;  %v54_v21 = vrot.slane %v52_v13, 5  ;;  %v58_v22 = vrot.slane %v56_v14, 4  ;;  %v1297_v28 = vld [vmem:[%s1739_s2 + $0x98] sm:$0xff]  ;;  %vm1468_vm5 = vmor %vm98_vm2, %vm99_vm3 }
   0x8   :  { %372 = vmatpush.bf16.msra.mxu2 %v1300_v5  ;;  %v90_v29 = vld [vmem:[%s1740_s0] sm:$0xe]  ;;  %v1288_v32 = vld [vmem:[%s1739_s2 + $0x50] sm:$0xff]  ;;  %v35_v33 = vld [vmem:[%s1740_s0 + $0xc] sm:$0xf]  ;;  %v64_v37 = vrot.slane %v62_v27, 5 }
   0x9   :  { %v49_v25 = vor.u32 %v48_v20, %v45_v19  ;;  %v59_v26 = vor.u32 %v58_v22, %v54_v21  ;;  %v1062_v38 = vrot.slane %v90_v29, 9  ;;  %v36_v39 = vld [vmem:[%s1740_s0 + $0x10] sm:$0xf]  ;;  %v105_v42 = vrot.slane %v103_v30, 4  ;;  %v1279_v47 = vld [vmem:[%s1739_s2 + $0x8] sm:$0xff]  ;;  %v1278_v59 = vld [vmem:[%s1739_s2] sm:$0xff] }
   0xa   :  { %335 = vmatpush.bf16.msra.mxu0 %v1283_v6  ;;  %v1296_v40 = vld [vmem:[%s1739_s2 + $0x90] sm:$0xff]  ;;  %v67_v44 = vshrl.u32 %v35_v33, 16  ;;  %v70_v45 = vshll.u32 %v35_v33, 16  ;;  %v76_v46 = vshll.u32 %v36_v39, 16  ;;  %v1287_v48 = vld [vmem:[%s1739_s2 + $0x48] sm:$0xff]  ;;  %v80_v52 = vshrl.u32 %v36_v39, 16  ;;  %vm1523_vm8 = vmand %vm412_vm6, %vm505_vm7 }
   0xb   :  { %354 = vmatpush.bf16.msra.mxu1 %v1291_v7  ;;  %v50_v35 = vrot.slane %v49_v25, 4  ;;  %v60_v36 = vrot.slane %v59_v26, 4  ;;  %v104_v51 = vsel %vm1468_vm5, %v1062_v38, %v103_v30  ;;  %v1295_v53 = vld [vmem:[%s1739_s2 + $0x88] sm:$0xff]  ;;  %v107_v54 = vsel %vm1468_vm5, %v105_v42, %v106_v43  ;;  %v1286_v60 = vld [vmem:[%s1739_s2 + $0x40] sm:$0xff]  ;;  %v38_v2 = vld [vmem:[%s1740_s0 + $0x14] sm:$0x1] }
   0xc   :  { %373 = vmatpush.bf16.msra.mxu2 %v1299_v8  ;;  %v133_v57 = vunpack.c.l.b16 %v104_v51  ;;  %v69_v58 = vrot.slane %v67_v44, 4  ;;  %v134_v61 = vunpack.c.l.b16 %v107_v54  ;;  %v72_v62 = vrot.slane %v70_v45, 5  ;;  %v1294_v1 = vld [vmem:[%s1739_s2 + $0x80] sm:$0xff]  ;;  %v91_v10 = vld [vmem:[%s1740_s0 + $0xc] sm:$0xe]  ;;  %vm514_vm10 = vmand %vm412_vm6, %vm513_vm9 }
   0xd   :  { %v55_v49 = vsel %vm1457_vm4, %v50_v35, %v54_v21  ;;  %v65_v50 = vsel %vm1457_vm4, %v60_v36, %v64_v37  ;;  %v78_v63 = vrot.slane %v76_v46, 5  ;;  %v82_v0 = vrot.slane %v80_v52, 4  ;;  %v1276_v3 = vld [vmem:[%s1740_s0] sm:$0xff]  ;;  %v1277_v25 = vld [vmem:[%s1740_s0 + $0xc] sm:$0xff]  ;;  %v507_v38 = vld [vmem:[#allocation2] sm:$0x1] }
   0xe   :  { %336 = vmatpush.bf16.msra.mxu0 %v1282_v15  ;;  %v125_v55 = vunpack.c.l.b16 %v55_v49  ;;  %v126_v56 = vunpack.c.l.b16 %v65_v50  ;;  %v137_v5 = vpack.c.b16 %v134_v61, %v133_v57  ;;  %v73_v6 = vor.u32 %v72_v62, %v69_v58  ;;  %v414_v30 = vld [vmem:[%s1741_s8] sm:$0xff]  ;;  %v515_v42 = vld [vmem:[#allocation2 + $0x8] sm:$0x1]  ;;  %vm1648_vm1 = vmor %vm505_vm7, %vm525_vm15 }
   0xf   :  { %355 = vmatpush.bf16.msra.mxu1 %v1290_v16  ;;  %v83_v7 = vor.u32 %v82_v0, %v78_v63  ;;  %v86_v8 = vshll.u32 %v38_v2, 16  ;;  %v110_v9 = vrot.slane %v36_v39, 5  ;;  %v1063_v14 = vrot.slane %v91_v10, 9  ;;  %430 = vmatpush.xpose.msra.mxu3 %v414_v30  ;;  %v510_v39 = vld [vmem:[#allocation2 + $0x10] sm:$0x1] }
  0x10   :  { %374 = vmatpush.bf16.msra.mxu2 %v1298_v17  ;;  %v129_v4 = vpack.c.b16 %v126_v56, %v125_v55  ;;  %v74_v11 = vrot.slane %v73_v6, 4  ;;  %v113_v16 = vrot.slane %v38_v2, 5  ;;  %v518_v43 = vld [vmem:[#allocation2 + $0x18] sm:$0x1]  ;;  %v508_v45 = vsel %vm1523_vm8, 0, %v507_v38 }
  0x11   :  { %v84_v12 = vrot.slane %v83_v7, 4  ;;  %v88_v13 = vrot.slane %v86_v8, 5  ;;  %v112_v15 = vrot.slane %v110_v9, 4  ;;  %v111_v19 = vsel %vm1468_vm5, %v1063_v14, %v110_v9  ;;  %509 = vst [vmem:[#allocation2] sm:$0x1] %v508_v45  ;;  %v1327_v45 = vld [vmem:[%s1742_s5 + $0xb8] sm:$0xff] }
  0x12   :  { %337 = vmatpush.bf16.msra.mxu0 %v1281_v23  ;;  %v79_v17 = vsel %vm1457_vm4, %v74_v11, %v78_v63  ;;  %v135_v23 = vunpack.c.l.b16 %v111_v19  ;;  %v511_v46 = vsel %vm1523_vm8, 0, %v510_v39  ;;  %v516_v49 = vsel %vm514_vm10, 0, %v515_v42 }
  0x13   :  { %356 = vmatpush.bf16.msra.mxu1 %v1289_v24  ;;  %v89_v18 = vsel %vm1457_vm4, %v84_v12, %v88_v13  ;;  %v114_v20 = vsel %vm1468_vm5, %v112_v15, %v113_v16  ;;  %v127_v21 = vunpack.c.l.b16 %v79_v17  ;;  %485 = vmatpush.msrb.mxu3 %v414_v30  ;;  %v519_v50 = vsel %vm514_vm10, 0, %v518_v43  ;;  %512 = vst [vmem:[#allocation2 + $0x10] sm:$0x1] %v511_v46  ;;  %v1309_v46 = vld [vmem:[%s1742_s5 + $0x28] sm:$0xff] }
  0x14   :  { %375 = vmatpush.bf16.msra.mxu2 %v1297_v28  ;;  %v128_v22 = vunpack.c.l.b16 %v89_v18  ;;  %v136_v24 = vunpack.c.l.b16 %v114_v20  ;;  %517 = vst [vmem:[#allocation2 + $0x8] sm:$0x1] %v516_v49  ;;  %v1308_v49 = vld [vmem:[%s1742_s5 + $0x20] sm:$0xff]  ;;  %vm567_vm0 = vcmask 1043456  }
  0x15   :  { %520 = vst [vmem:[#allocation2 + $0x18] sm:$0x1] %v519_v50  ;;  %v1318_v50 = vld [vmem:[%s1742_s5 + $0x70] sm:$0xff]  ;;  %vm1653_vm2 = vmand %vm567_vm0, %vm513_vm9 }
  0x16   :  { %338 = vmatpush.bf16.msra.mxu0 %v1280_v31  ;;  %v130_v26 = vpack.c.b16 %v128_v22, %v127_v21  ;;  %v138_v27 = vpack.c.b16 %v136_v24, %v135_v23 }
  0x17   :  { %357 = vmatpush.bf16.msra.mxu1 %v1288_v32 }
  0x18   :  { %376 = vmatpush.bf16.msra.mxu2 %v1296_v40 }
  0x1a   :  { %339 = vmatpush.bf16.msra.mxu0 %v1279_v47 }
  0x1b   :  { %358 = vmatpush.bf16.msra.mxu1 %v1287_v48 }
  0x1c   :  { %377 = vmatpush.bf16.msra.mxu2 %v1295_v53 }
  0x1e   :  { %340 = vmatpush.bf16.msra.mxu0 %v1278_v59 }
  0x1f   :  { %359 = vmatpush.bf16.msra.mxu1 %v1286_v60 }
  0x20   :  { %378 = vmatpush.bf16.msra.mxu2 %v1294_v1 }
  0x21   :  { %341 = vmatmul.bf16.vlgmr.msra.gmra.mxu0 %v1276_v3 }
  0x22   :  { %360 = vmatmul.bf16.vlgmr.msra.gmra.mxu1 %v129_v4 }
  0x23   :  { %379 = vmatmul.bf16.vlgmr.msra.gmra.mxu2 %v137_v5  ;;  %915 = vmatpush.bf16.msrb.mxu1 %v1327_v45  ;;  %v576_v45 = vld [vmem:[#allocation2 + $0x10] sm:$0xf] }
  0x24   :  { %973 = vmatpush.xpose.msrb.mxu2 %v414_v30 }
  0x28   :  { %1027 = vmatpush.msra.mxu2 %v414_v30 }
  0x31   :  { %346 = vmatmul.bf16.gmra.mxu0 %v1277_v25  ;;  %v1311_v25 = vld [vmem:[%s1742_s5 + $0x38] sm:$0xff] }
  0x32   :  { %365 = vmatmul.bf16.gmra.mxu1 %v130_v26 }
  0x33   :  { %384 = vmatmul.bf16.gmra.mxu2 %v138_v27 }
  0x9e   :  { %v342_v28 = vpop.f32.mrf.mxu0 }
  0x9f   :  { %v361_v29 = vpop.f32.mrf.mxu1 }
  0xa0   :  { %v362_v44 = vadd.f32 %v361_v29, %v342_v28 }
  0xa6   :  { %v380_v31 = vpop.f32.mrf.mxu2  ;;  %v344_v32 = vpop.f32.mrf.mxu0 }
  0xa7   :  { %v363_v33 = vpop.f32.mrf.mxu1  ;;  %v1535_v53 = vadd.f32 %v380_v31, %v362_v44  ;;  %v1310_v44 = vld [vmem:[%s1742_s5 + $0x30] sm:$0xff] }
  0xa8   :  { %v364_v47 = vadd.f32 %v363_v33, %v344_v32  ;;  %v441_v33 = vld [vmem:[%s1743_s3] sm:$0x1] }
  0xa9   :  { %v399_v58 = vmul.f32 %v1535_v53, %v1535_v53 }
  0xae   :  { %v382_v35 = vpop.f32.mrf.mxu2  ;;  %v347_v36 = vpop.f32.mrf.mxu0 }
  0xaf   :  { %v366_v37 = vpop.f32.mrf.mxu1  ;;  %v1533_v52 = vadd.f32 %v382_v35, %v364_v47  ;;  %v1319_v47 = vld [vmem:[%s1742_s5 + $0x78] sm:$0xff] }
  0xb0   :  { %v367_v48 = vadd.f32 %v366_v37, %v347_v36  ;;  %v459_v37 = vld [vmem:[%s1744_s4] sm:$0x1]  ;;  %896 = vmatpush.bf16.msrb.mxu0 %v1319_v47 }
  0xb1   :  { %v400_v57 = vmul.f32 %v1533_v52, %v1533_v52  ;;  %v390_v59 = vadd.f32 %v1533_v52, %v1535_v53 }
  0xb3   :  { %v403_v63 = vadd.f32 %v400_v57, %v399_v58  ;;  %v1324_v57 = vld [vmem:[%s1742_s5 + $0xa0] sm:$0xff]  ;;  %v1306_v58 = vld [vmem:[%s1742_s5 + $0x10] sm:$0xff] }
  0xb4   :  { %897 = vmatpush.bf16.msrb.mxu0 %v1318_v50 }
  0xb6   :  { %v385_v51 = vpop.f32.mrf.mxu2  ;;  %v349_v55 = vpop.f32.mrf.mxu0 }
  0xb7   :  { %v1537_v54 = vadd.f32 %v385_v51, %v367_v48  ;;  %v368_v56 = vpop.f32.mrf.mxu1  ;;  %v1326_v48 = vld [vmem:[%s1742_s5 + $0xb0] sm:$0xff]  ;;  %v1325_v51 = vld [vmem:[%s1742_s5 + $0xa8] sm:$0xff] }
  0xb8   :  { %v369_v61 = vadd.f32 %v368_v56, %v349_v55  ;;  %916 = vmatpush.bf16.msrb.mxu1 %v1326_v48  ;;  %v1307_v55 = vld [vmem:[%s1742_s5 + $0x18] sm:$0xff]  ;;  %v1317_v56 = vld [vmem:[%s1742_s5 + $0x68] sm:$0xff] }
  0xb9   :  { %v401_v60 = vmul.f32 %v1537_v54, %v1537_v54  ;;  %v391_v0 = vadd.f32 %v390_v59, %v1537_v54  ;;  %898 = vmatpush.bf16.msrb.mxu0 %v1317_v56  ;;  %v1316_v59 = vld [vmem:[%s1742_s5 + $0x60] sm:$0xff] }
  0xbb   :  { %v404_v2 = vadd.f32 %v403_v63, %v401_v60  ;;  %v1323_v60 = vld [vmem:[%s1742_s5 + $0x98] sm:$0xff]  ;;  %v1322_v63 = vld [vmem:[%s1742_s5 + $0x90] sm:$0xff] }
  0xbc   :  { %917 = vmatpush.bf16.msrb.mxu1 %v1325_v51 }
  0xbd   :  { %899 = vmatpush.bf16.msrb.mxu0 %v1316_v59 }
  0xbe   :  { %v387_v62 = vpop.f32.mrf.mxu2 }
  0xbf   :  { %v1548_v1 = vadd.f32 %v387_v62, %v369_v61  ;;  %v1305_v61 = vld [vmem:[%s1742_s5 + $0x8] sm:$0xff]  ;;  %v1315_v62 = vld [vmem:[%s1742_s5 + $0x58] sm:$0xff] }
  0xc0   :  { %918 = vmatpush.bf16.msrb.mxu1 %v1324_v57 }
  0xc1   :  { %v392_v3 = vadd.f32 %v391_v0, %v1548_v1  ;;  %v402_v4 = vmul.f32 %v1548_v1, %v1548_v1  ;;  %v1304_v0 = vld [vmem:[%s1742_s5] sm:$0xff]  ;;  %900 = vmatpush.bf16.msrb.mxu0 %v1315_v62 }
  0xc3   :  { %v393_v5 = vrot.slane %v392_v3, 4  ;;  %v405_v6 = vadd.f32 %v404_v2, %v402_v4  ;;  %v1622_v2 = vld [vmem:[%s1742_s5 + $0x50] sm:$0xff] }
  0xc4   :  { %919 = vmatpush.bf16.msrb.mxu1 %v1323_v60 }
  0xc5   :  { %v394_v7 = vadd.f32 %v393_v5, %v392_v3  ;;  %v406_v8 = vrot.slane %v405_v6, 4  ;;  %v1321_v3 = vld [vmem:[%s1742_s5 + $0x88] sm:$0xff]  ;;  %901 = vmatpush.bf16.msrb.mxu0 %v1622_v2 }
  0xc7   :  { %v395_v9 = vrot.slane %v394_v7, 2  ;;  %v407_v10 = vadd.f32 %v406_v8, %v405_v6  ;;  %v1631_v6 = vld [vmem:[%s1742_s5 + $0x48] sm:$0xff]  ;;  %v1320_v8 = vld [vmem:[%s1742_s5 + $0x80] sm:$0xff] }
  0xc8   :  { %920 = vmatpush.bf16.msrb.mxu1 %v1322_v63 }
  0xc9   :  { %v396_v11 = vadd.f32 %v395_v9, %v394_v7  ;;  %v408_v12 = vrot.slane %v407_v10, 2  ;;  %902 = vmatpush.bf16.msrb.mxu0 %v1631_v6 }
  0xcb   :  { %v397_v13 = vrot.slane %v396_v11, 1  ;;  %v409_v14 = vadd.f32 %v408_v12, %v407_v10 }
  0xcc   :  { %921 = vmatpush.bf16.msrb.mxu1 %v1321_v3 }
  0xcd   :  { %v410_v15 = vrot.slane %v409_v14, 1  ;;  %v398_v16 = vadd.f32 %v397_v13, %v396_v11 }
  0xcf   :  { %v411_v17 = vadd.f32 %v410_v15, %v409_v14 }
  0xd0   :  { %922 = vmatpush.bf16.msrb.mxu1 %v1320_v8 }
  0xd1   :  { %v413_v18 = vsel %vm412_vm6, %v398_v16, %v411_v17  ;;  %v1644_v17 = vld [vmem:[%s1742_s5 + $0x40] sm:$0xff] }
  0xd2   :  { %431 = vmatmul.f32.vlgmr.msra.gmra.mxu3 %v413_v18  ;;  %903 = vmatpush.bf16.msrb.mxu0 %v1644_v17 }
  0xd3   :  { %877 = vmatpush.bf16.msra.mxu3 %v1311_v25 }
  0xd7   :  { %878 = vmatpush.bf16.msra.mxu3 %v1310_v44 }
  0xdb   :  { %879 = vmatpush.bf16.msra.mxu3 %v1309_v46 }
  0xdf   :  { %880 = vmatpush.bf16.msra.mxu3 %v1308_v49 }
  0xe3   :  { %881 = vmatpush.bf16.msra.mxu3 %v1307_v55 }
  0xe7   :  { %882 = vmatpush.bf16.msra.mxu3 %v1306_v58 }
  0xeb   :  { %883 = vmatpush.bf16.msra.mxu3 %v1305_v61 }
  0xef   :  { %884 = vmatpush.bf16.msra.mxu3 %v1304_v0 }
 0x155   :  { %v432_v19 = vpop.f32.mrf.mxu3 }
 0x156   :  { %v435_v20 = vmul.f32 0.001953125, %v432_v19 }
 0x158   :  { %v436_v21 = vmul.f32 %v435_v20, %v435_v20 }
 0x15a   :  { %v438_v22 = vrot.slane %v436_v21, 7 }
 0x15c   :  { %v440_v23 = vsub.f32 %v435_v20, %v438_v22 }
 0x15e   :  { %v442_v24 = vadd.f32 1e-05, %v440_v23 }
 0x160   :  { %1336 = vrsqrt.f32 %v442_v24  ;;  %vm449_vm12 = vweird.f32 %v442_v24 }
 0x166   :  { %v1337_v26 = vpop.eup %1336 }
 0x167   :  { %v444_v27 = vmul.f32 %v1337_v26, %v442_v24  ;;  %vm450_vm11 = vweird.f32 %v1337_v26 }
 0x168   :  { %vm451_vm13 = vmor %vm449_vm12, %vm450_vm11 }
 0x169   :  { %v445_v28 = vmul.f32 %v1337_v26, %v444_v27 }
 0x16b   :  { %v446_v29 = vmul.f32 0.5, %v445_v28 }
 0x16d   :  { %v447_v30 = vsub.f32 1.5, %v446_v29 }
 0x16f   :  { %v448_v31 = vmul.f32 %v1337_v26, %v447_v30 }
 0x171   :  { %v452_v32 = vsel %vm451_vm13, %v1337_v26, %v448_v31  ;;  %v569_v31 = vld [vmem:[#allocation2] sm:$0xf] }
 0x172   :  { %454 = vst [vmem:[#allocation1] sm:$0xff] %v452_v32 }
 0x179   :  { %v456_v35 = vld [vmem:[#allocation1 + $0x1] ss:$9 sm:$0xff] }
 0x17a   :  { %v458_v36 = vmul.f32 %v456_v35, %v441_v33 }
 0x17c   :  { %v460_v38 = vmul.f32 %v458_v36, %v435_v20 }
 0x17e   :  { %v461_v39 = vsub.f32 %v459_v37, %v460_v38  ;;  %v573_v38 = vld [vmem:[#allocation2 + $0x8] sm:$0x1] }
 0x180   :  { %v463_v42 = vperm.slane %v461_v39, 0 }
 0x182   :  { %v465_v43 = vsel %vm412_vm6, %v458_v36, %v463_v42 }
 0x183   :  { %1168 = vmatmul.msk.f32.vlgmr.msrb.gmra.mxu3 %vm466_vm14, %v465_v43 }
 0x184   :  { %1328 = vmatpush.bf16.msrb.mxu3 %v1319_v47 }
 0x188   :  { %1329 = vmatpush.bf16.msrb.mxu3 %v1318_v50 }
 0x18c   :  { %1330 = vmatpush.bf16.msrb.mxu3 %v1317_v56  ;;  %v580_v56 = vld [vmem:[#allocation2 + $0x18] sm:$0x1] }
 0x190   :  { %1331 = vmatpush.bf16.msrb.mxu3 %v1316_v59 }
 0x194   :  { %1332 = vmatpush.bf16.msrb.mxu3 %v1315_v62 }
 0x198   :  { %1333 = vmatpush.bf16.msrb.mxu3 %v1622_v2 }
 0x19c   :  { %1334 = vmatpush.bf16.msrb.mxu3 %v1631_v6 }
 0x1a0   :  { %1335 = vmatpush.bf16.msrb.mxu3 %v1644_v17 }
 0x206   :  { %v487_v4 = vpop.f32.mrf.mxu3 }
 0x207   :  { %v490_v5 = vperm.slane %v487_v4, 0  ;;  %v495_v7 = vperm.slane %v487_v4, 1 }
 0x209   :  { %v491_v9 = vmul.f32 %v490_v5, %v1535_v53  ;;  %v492_v10 = vmul.f32 %v490_v5, %v1533_v52  ;;  %v493_v11 = vmul.f32 %v490_v5, %v1537_v54  ;;  %v494_v12 = vmul.f32 %v490_v5, %v1548_v1 }
 0x20b   :  { %v496_v13 = vadd.f32 %v495_v7, %v491_v9  ;;  %v497_v14 = vadd.f32 %v495_v7, %v492_v10  ;;  %v498_v15 = vadd.f32 %v495_v7, %v493_v11  ;;  %v499_v16 = vadd.f32 %v495_v7, %v494_v12 }
 0x20d   :  { %v500_v53 = vmax.f32 %v496_v13, 0.0  ;;  %v501_v18 = vmax.f32 %v497_v14, 0.0  ;;  %v502_v52 = vmax.f32 %v498_v15, 0.0  ;;  %v503_v19 = vmax.f32 %v499_v16, 0.0 }
 0x20f   :  { %v521_v54 = vpack.c.bf16 %v500_v53, %v500_v53  ;;  %v522_v1 = vpack.c.bf16 %v501_v18, %v501_v18  ;;  %v523_v20 = vpack.c.bf16 %v502_v52, %v502_v52  ;;  %v524_v21 = vpack.c.bf16 %v503_v19, %v503_v19 }
 0x211   :  { %v528_v22 = vshrl.u32 %v521_v54, 16  ;;  %v536_v23 = vshrl.u32 %v522_v1, 16  ;;  %v545_v24 = vshrl.u32 %v523_v20, 16  ;;  %v553_v25 = vshrl.u32 %v524_v21, 16 }
 0x212   :  { %v531_v28 = vshll.u32 %v521_v54, 16  ;;  %v539_v30 = vshll.u32 %v522_v1, 16  ;;  %v548_v35 = vshll.u32 %v523_v20, 16  ;;  %v556_v37 = vshll.u32 %v524_v21, 16 }
 0x213   :  { %v530_v27 = vrot.slane %v528_v22, 7  ;;  %v538_v29 = vrot.slane %v536_v23, 7  ;;  %v547_v33 = vrot.slane %v545_v24, 7  ;;  %v555_v36 = vrot.slane %v553_v25, 7 }
 0x215   :  { %v533_v39 = vor.u32 %v531_v28, %v530_v27  ;;  %v534_v42 = vrot.slane %v530_v27, 4  ;;  %v541_v43 = vor.u32 %v539_v30, %v538_v29  ;;  %v543_v44 = vrot.slane %v538_v29, 4 }
 0x216   :  { %v550_v46 = vor.u32 %v548_v35, %v547_v33  ;;  %v551_v47 = vrot.slane %v547_v33, 4  ;;  %v558_v48 = vor.u32 %v556_v37, %v555_v36  ;;  %v560_v49 = vrot.slane %v555_v36, 4 }
 0x217   :  { %v542_v50 = vsel %vm1648_vm1, %v534_v42, %v541_v43  ;;  %v570_v51 = vsel %vm1653_vm2, %v533_v39, %v569_v31  ;;  %v574_v55 = vsel %vm1523_vm8, %v543_v44, %v573_v38 }
 0x218   :  { %571 = vst [vmem:[#allocation2] sm:$0xf] %v570_v51  ;;  %v577_v57 = vsel %vm1653_vm2, %v550_v46, %v576_v45  ;;  %v559_v58 = vsel %vm1648_vm1, %v551_v47, %v558_v48  ;;  %v581_v59 = vsel %vm1523_vm8, %v560_v49, %v580_v56 }
 0x219   :  { %572 = vst [vmem:[#allocation2 + $0x4] sm:$0xf] %v542_v50 }
 0x21a   :  { %575 = vst [vmem:[#allocation2 + $0x8] sm:$0x1] %v574_v55 }
 0x21b   :  { %578 = vst [vmem:[#allocation2 + $0x10] sm:$0xf] %v577_v57 }
 0x21c   :  { %579 = vst [vmem:[#allocation2 + $0x14] sm:$0xf] %v559_v58 }
 0x21d   :  { %582 = vst [vmem:[#allocation2 + $0x18] sm:$0x1] %v581_v59 }
 0x21f   :  { %v637_v60 = vld [vmem:[#allocation2] sm:$0xe] }
 0x220   :  { %v583_v61 = vld [vmem:[#allocation2] sm:$0xf]  ;;  %v584_v63 = vld [vmem:[#allocation2 + $0x4] sm:$0xf]  ;;  %v1169_v0 = vrot.slane %v637_v60, 9 }
 0x221   :  { %v1302_v62 = vld [vmem:[#allocation2] sm:$0xff]  ;;  %v590_v3 = vshrl.u32 %v583_v61, 16  ;;  %v593_v4 = vshll.u32 %v583_v61, 16  ;;  %v587_v5 = vld [vmem:[#allocation2 + $0x8] sm:$0x1]  ;;  %v647_v7 = vrot.slane %v584_v63, 5 }
 0x222   :  { %v599_v8 = vshll.u32 %v584_v63, 16  ;;  %v603_v2 = vshrl.u32 %v584_v63, 16  ;;  %885 = vmatmul.bf16.vlgmr.msra.gmra.mxu3 %v1302_v62  ;;  %v650_v40 = vrot.slane %v587_v5, 5  ;;  %v609_v11 = vshll.u32 %v587_v5, 16  ;;  %v585_v54 = vld [vmem:[#allocation2 + $0x10] sm:$0xf] }
 0x223   :  { %v592_v9 = vrot.slane %v590_v3, 4  ;;  %v595_v10 = vrot.slane %v593_v4, 5  ;;  %v648_v6 = vsel %vm1468_vm5, %v1169_v0, %v647_v7  ;;  %v649_v12 = vrot.slane %v647_v7, 4  ;;  %v586_v18 = vld [vmem:[#allocation2 + $0x14] sm:$0xf] }
 0x224   :  { %v601_v13 = vrot.slane %v599_v8, 5  ;;  %v605_v14 = vrot.slane %v603_v2, 4  ;;  %v677_v52 = vunpack.c.l.b16 %v648_v6  ;;  %v611_v20 = vrot.slane %v609_v11, 5  ;;  %v588_v32 = vld [vmem:[#allocation2 + $0x18] sm:$0x1]  ;;  %v1303_v44 = vld [vmem:[#allocation2 + $0x10] sm:$0xff] }
 0x225   :  { %v596_v15 = vor.u32 %v595_v10, %v592_v9  ;;  %v651_v16 = vsel %vm1468_vm5, %v649_v12, %v650_v40  ;;  %v623_v23 = vshll.u32 %v586_v18, 16  ;;  %v627_v24 = vshrl.u32 %v586_v18, 16  ;;  %v638_v35 = vld [vmem:[#allocation2 + $0x10] sm:$0xe] }
 0x226   :  { %v606_v53 = vor.u32 %v605_v14, %v601_v13  ;;  %v678_v19 = vunpack.c.l.b16 %v651_v16  ;;  %v654_v27 = vrot.slane %v586_v18, 5  ;;  %v614_v28 = vshrl.u32 %v585_v54, 16 }
 0x227   :  { %v597_v17 = vrot.slane %v596_v15, 4  ;;  %v617_v30 = vshll.u32 %v585_v54, 16  ;;  %v625_v33 = vrot.slane %v623_v23, 5  ;;  %v629_v36 = vrot.slane %v627_v24, 4 }
 0x228   :  { %v607_v1 = vrot.slane %v606_v53, 4  ;;  %v681_v21 = vpack.c.b16 %v678_v19, %v677_v52  ;;  %v656_v37 = vrot.slane %v654_v27, 4  ;;  %v616_v38 = vrot.slane %v614_v28, 4 }
 0x229   :  { %v602_v22 = vsel %vm1457_vm4, %v597_v17, %v601_v13  ;;  %v619_v39 = vrot.slane %v617_v30, 5  ;;  %v1170_v42 = vrot.slane %v638_v35, 9  ;;  %v657_v43 = vrot.slane %v588_v32, 5 }
 0x22a   :  { %v612_v25 = vsel %vm1457_vm4, %v607_v1, %v611_v20  ;;  %v669_v26 = vunpack.c.l.b16 %v602_v22  ;;  %923 = vmatmul.bf16.vlgmr.msrb.gmra.mxu1 %v681_v21  ;;  %v630_v47 = vor.u32 %v629_v36, %v625_v33  ;;  %v633_v48 = vshll.u32 %v588_v32, 16 }
 0x22b   :  { %v670_v29 = vunpack.c.l.b16 %v612_v25  ;;  %v658_v45 = vsel %vm1468_vm5, %v656_v37, %v657_v43  ;;  %v620_v46 = vor.u32 %v619_v39, %v616_v38  ;;  %v655_v49 = vsel %vm1468_vm5, %v1170_v42, %v654_v27 }
 0x22c   :  { %v680_v50 = vunpack.c.l.b16 %v658_v45  ;;  %v631_v55 = vrot.slane %v630_v47, 4  ;;  %v679_v56 = vunpack.c.l.b16 %v655_v49  ;;  %v635_v57 = vrot.slane %v633_v48, 5 }
 0x22d   :  { %v673_v31 = vpack.c.b16 %v670_v29, %v669_v26  ;;  %v621_v51 = vrot.slane %v620_v46, 4 }
 0x22e   :  { %v682_v58 = vpack.c.b16 %v680_v50, %v679_v56  ;;  %v636_v60 = vsel %vm1457_vm4, %v631_v55, %v635_v57  ;;  %v984_v56 = vld [vmem:[%s1745_s6] sm:$0x1] }
 0x22f   :  { %904 = vmatmul.bf16.vlgmr.msrb.gmra.mxu0 %v673_v31  ;;  %v626_v59 = vsel %vm1457_vm4, %v621_v51, %v625_v33  ;;  %v672_v62 = vunpack.c.l.b16 %v636_v60 }
 0x230   :  { %v671_v61 = vunpack.c.l.b16 %v626_v59  ;;  %v1002_v59 = vld [vmem:[%s1746_s7] sm:$0x1] }
 0x232   :  { %890 = vmatmul.bf16.gmra.mxu3 %v1303_v44  ;;  %v674_v63 = vpack.c.b16 %v672_v62, %v671_v61 }
 0x23a   :  { %928 = vmatmul.bf16.gmra.mxu1 %v682_v58 }
 0x242   :  { %909 = vmatmul.bf16.vlgmr.msrb.gmra.mxu3 %v674_v63 }
 0x2a5   :  { %v886_v0 = vpop.f32.mrf.mxu3 }
 0x2a7   :  { %v924_v3 = vpop.f32.mrf.mxu1 }
 0x2ac   :  { %v905_v5 = vpop.f32.mrf.mxu0 }
 0x2ad   :  { %v888_v41 = vpop.f32.mrf.mxu3  ;;  %v906_v11 = vadd.f32 %v905_v5, %v886_v0 }
 0x2af   :  { %v926_v7 = vpop.f32.mrf.mxu1  ;;  %v1690_v12 = vadd.f32 %v924_v3, %v906_v11 }
 0x2b1   :  { %v943_v16 = vmul.f32 %v1690_v12, %v1690_v12 }
 0x2b4   :  { %v907_v2 = vpop.f32.mrf.mxu0 }
 0x2b5   :  { %v891_v4 = vpop.f32.mrf.mxu3  ;;  %v908_v40 = vadd.f32 %v907_v2, %v888_v41  ;;  %v1042_v2 = vld [vmem:[%s1747_s1] sm:$0xff] }
 0x2b7   :  { %v929_v9 = vpop.f32.mrf.mxu1  ;;  %v1688_v34 = vadd.f32 %v926_v7, %v908_v40  ;;  %v1043_v40 = vld [vmem:[%s1747_s1 + $0x8] sm:$0xff] }
 0x2b9   :  { %v944_v14 = vmul.f32 %v1688_v34, %v1688_v34  ;;  %v934_v53 = vadd.f32 %v1688_v34, %v1690_v12 }
 0x2bb   :  { %v947_v17 = vadd.f32 %v944_v14, %v943_v16 }
 0x2bd   :  { %v893_v8 = vpop.f32.mrf.mxu3 }
 0x2bf   :  { %v931_v19 = vpop.f32.mrf.mxu1 }
 0x2c5   :  { %v910_v10 = vpop.f32.mrf.mxu3 }
 0x2c6   :  { %v911_v6 = vadd.f32 %v910_v10, %v891_v4  ;;  %v1045_v10 = vld [vmem:[%s1747_s1 + $0x18] sm:$0xff] }
 0x2c8   :  { %v1692_v13 = vadd.f32 %v929_v9, %v911_v6  ;;  %v1044_v9 = vld [vmem:[%s1747_s1 + $0x10] sm:$0xff] }
 0x2ca   :  { %v945_v18 = vmul.f32 %v1692_v13, %v1692_v13  ;;  %v935_v54 = vadd.f32 %v934_v53, %v1692_v13 }
 0x2cc   :  { %v948_v20 = vadd.f32 %v947_v17, %v945_v18 }
 0x2cd   :  { %v912_v15 = vpop.f32.mrf.mxu3 }
 0x2ce   :  { %v913_v52 = vadd.f32 %v912_v15, %v893_v8 }
 0x2d0   :  { %v932_v1 = vadd.f32 %v931_v19, %v913_v52 }
 0x2d2   :  { %v936_v21 = vadd.f32 %v935_v54, %v932_v1  ;;  %v946_v22 = vmul.f32 %v932_v1, %v932_v1 }
 0x2d4   :  { %v937_v23 = vrot.slane %v936_v21, 4  ;;  %v949_v24 = vadd.f32 %v948_v20, %v946_v22 }
 0x2d6   :  { %v938_v25 = vadd.f32 %v937_v23, %v936_v21  ;;  %v950_v26 = vrot.slane %v949_v24, 4 }
 0x2d8   :  { %v939_v27 = vrot.slane %v938_v25, 2  ;;  %v951_v28 = vadd.f32 %v950_v26, %v949_v24 }
 0x2da   :  { %v940_v29 = vadd.f32 %v939_v27, %v938_v25  ;;  %v952_v30 = vrot.slane %v951_v28, 2 }
 0x2dc   :  { %v941_v31 = vrot.slane %v940_v29, 1  ;;  %v953_v32 = vadd.f32 %v952_v30, %v951_v28 }
 0x2de   :  { %v954_v33 = vrot.slane %v953_v32, 1  ;;  %v942_v35 = vadd.f32 %v941_v31, %v940_v29 }
 0x2e0   :  { %v955_v36 = vadd.f32 %v954_v33, %v953_v32 }
 0x2e2   :  { %v956_v37 = vsel %vm412_vm6, %v942_v35, %v955_v36 }
 0x2e3   :  { %974 = vmatmul.f32.vlgmr.msrb.gmra.mxu2 %v956_v37 }
 0x366   :  { %v975_v38 = vpop.f32.mrf.mxu2 }
 0x367   :  { %v978_v39 = vmul.f32 0.001953125, %v975_v38 }
 0x369   :  { %v979_v42 = vmul.f32 %v978_v39, %v978_v39 }
 0x36b   :  { %v981_v43 = vrot.slane %v979_v42, 7 }
 0x36d   :  { %v983_v44 = vsub.f32 %v978_v39, %v981_v43 }
 0x36f   :  { %v985_v45 = vadd.f32 1e-05, %v983_v44 }
 0x371   :  { %1338 = vrsqrt.f32 %v985_v45  ;;  %vm992_vm4 = vweird.f32 %v985_v45 }
 0x377   :  { %v1339_v46 = vpop.eup %1338 }
 0x378   :  { %v987_v47 = vmul.f32 %v1339_v46, %v985_v45  ;;  %vm993_vm3 = vweird.f32 %v1339_v46 }
 0x379   :  { %vm994_vm5 = vmor %vm992_vm4, %vm993_vm3 }
 0x37a   :  { %v988_v48 = vmul.f32 %v1339_v46, %v987_v47 }
 0x37c   :  { %v989_v49 = vmul.f32 0.5, %v988_v48 }
 0x37e   :  { %v990_v50 = vsub.f32 1.5, %v989_v49 }
 0x380   :  { %v991_v51 = vmul.f32 %v1339_v46, %v990_v50 }
 0x382   :  { %v995_v55 = vsel %vm994_vm5, %v1339_v46, %v991_v51 }
 0x383   :  { %997 = vst [vmem:[#allocation1] sm:$0xff] %v995_v55 }
 0x38a   :  { %v999_v57 = vld [vmem:[#allocation1 + $0x1] ss:$9 sm:$0xff] }
 0x38b   :  { %v1001_v58 = vmul.f32 %v999_v57, %v984_v56 }
 0x38d   :  { %v1003_v60 = vmul.f32 %v1001_v58, %v978_v39 }
 0x38f   :  { %v1004_v61 = vsub.f32 %v1002_v59, %v1003_v60 }
 0x391   :  { %v1006_v62 = vperm.slane %v1004_v61, 0 }
 0x393   :  { %v1008_v63 = vsel %vm412_vm6, %v1001_v58, %v1006_v62 }
 0x394   :  { %1275 = vmatmul.msk.f32.vlgmr.msra.gmra.mxu2 %vm466_vm14, %v1008_v63 }
 0x417   :  { %v1029_v0 = vpop.f32.mrf.mxu2 }
 0x418   :  { %v1032_v41 = vperm.slane %v1029_v0, 0  ;;  %v1037_v3 = vperm.slane %v1029_v0, 1 }
 0x41a   :  { %v1033_v4 = vmul.f32 %v1032_v41, %v1690_v12  ;;  %v1034_v5 = vmul.f32 %v1032_v41, %v1688_v34  ;;  %v1035_v7 = vmul.f32 %v1032_v41, %v1692_v13  ;;  %v1036_v8 = vmul.f32 %v1032_v41, %v932_v1 }
 0x41c   :  { %v1038_v11 = vadd.f32 %v1037_v3, %v1033_v4  ;;  %v1039_v6 = vadd.f32 %v1037_v3, %v1034_v5  ;;  %v1040_v34 = vadd.f32 %v1037_v3, %v1035_v7  ;;  %v1041_v12 = vadd.f32 %v1037_v3, %v1036_v8 }
 0x41e   :  { %v1046_v13 = vadd.f32 %v1042_v2, %v1038_v11  ;;  %v1047_v14 = vadd.f32 %v1043_v40, %v1039_v6  ;;  %v1048_v15 = vadd.f32 %v1044_v9, %v1040_v34  ;;  %v1049_v16 = vadd.f32 %v1045_v10, %v1041_v12 }
 0x420   :  { %v1050_v53 = vmax.f32 %v1046_v13, 0.0  ;;  %v1051_v18 = vmax.f32 %v1047_v14, 0.0  ;;  %v1052_v52 = vmax.f32 %v1048_v15, 0.0  ;;  %v1053_v19 = vmax.f32 %v1049_v16, 0.0 }
 0x422   :  { %1054 = vst [vmem:[%s1748_s9] sm:$0xff] %v1050_v53 }
 0x423   :  { %1055 = vst [vmem:[%s1748_s9 + $0x8] sm:$0xff] %v1051_v18 }
 0x424   :  { %1056 = vst [vmem:[%s1748_s9 + $0x10] sm:$0xff] %v1052_v52 }
 0x425   :  { %1057 = vst [vmem:[%s1748_s9 + $0x18] sm:$0xff] %v1053_v19 }

</bundles_post_ra>
